<compile_context>
chip_gen: v6e
topology: v6e:2x2x1
jax: 0.10.0
libtpu: 0.0.40
codegen_flags: <defaults>
</compile_context>

<pallas_src>
import functools

import jax
import jax.numpy as jnp
from jax import lax
from jax.experimental import pallas as pl
from jax.experimental.pallas import tpu as pltpu

EPS = 1e-5


def _round_up(a: int, b: int) -> int:
    return ((a + b - 1) // b) * b


def _residual_kernel(p_drop, use_bf16_mxu,
                     seed_ref,                                   # scalar prefetch (SMEM)
                     x_ref, w_ref, b_ref, gamma_ref, beta_ref,   # inputs
                     o_ref):                                     # output
    x = x_ref[...].astype(jnp.float32)                           # (TM, D) residual path, f32
    tm, d = x.shape

    # ---- Sublayer: Linear(D -> D) on the MXU ----
    if use_bf16_mxu:
        xm = x.astype(jnp.bfloat16)
        wm = w_ref[...].astype(jnp.bfloat16)
    else:
        xm = x
        wm = w_ref[...].astype(jnp.float32)
    y = jnp.dot(xm, wm, preferred_element_type=jnp.float32)      # (TM, D), f32 accumulate
    y = y + b_ref[...].astype(jnp.float32)

    # ---- Dropout (inverted, training mode), stateless counter-hash PRNG ----
    if p_drop >= 1.0:
        y = jnp.zeros_like(y)
    elif p_drop > 0.0:
        # Unique 32-bit counter per element of the *global* (N, D) activation.
        row0 = lax.convert_element_type(pl.program_id(0) * tm, jnp.uint32)
        r = lax.convert_element_type(
            lax.broadcasted_iota(jnp.int32, y.shape, 0), jnp.uint32)
        c = lax.convert_element_type(
            lax.broadcasted_iota(jnp.int32, y.shape, 1), jnp.uint32)
        seed = lax.convert_element_type(seed_ref[0], jnp.uint32)
        h = (r + row0) * jnp.uint32(d) + c
        h = h + seed * jnp.uint32(0x9E3779B9)
        # lowbias32 integer finalizer (good avalanche, pure VPU int ops).
        h = h ^ (h >> 16)
        h = h * jnp.uint32(0x7FEB352D)
        h = h ^ (h >> 15)
        h = h * jnp.uint32(0x846CA68B)
        h = h ^ (h >> 16)
        # Threshold test directly on the 32-bit hash (no float-uniform build).
        thresh = jnp.uint32(int(p_drop * 4294967296.0))
        keep = h >= thresh
        y = jnp.where(keep, y * jnp.float32(1.0 / (1.0 - p_drop)), 0.0)

    # ---- Residual add (single-input case: skip tensor is x itself) ----
    z = x + y

    # ---- LayerNorm over the feature axis (one-pass stats, center once) ----
    inv_d = jnp.float32(1.0 / d)
    s1 = jnp.sum(z, axis=-1, keepdims=True)
    s2 = jnp.sum(z * z, axis=-1, keepdims=True)
    mu = s1 * inv_d
    var = jnp.maximum(s2 * inv_d - mu * mu, 0.0)
    inv = lax.rsqrt(var + jnp.float32(EPS))
    zn = (z - mu) * inv

    gamma = gamma_ref[...].astype(jnp.float32)                   # (1, D)
    beta = beta_ref[...].astype(jnp.float32)                     # (1, D)
    o_ref[...] = (zn * gamma + beta).astype(o_ref.dtype)


def residual_forward(x, w, b, gamma, beta, *,
                     p_drop=0.1, seed=0, tm=256, mxu_bf16=True):
    """x: (B, S, D);  w: (D, D) laid out so y = x @ w;  b/gamma/beta: (D,)."""
    B, S, D = x.shape
    N = B * S

    # Row tile: big for throughput, auto-shrunk to the (padded) token count and
    # kept a multiple of 8 (sublane constraint).
    tm_eff = min(_round_up(tm, 8), _round_up(N, 8))
    n_pad = _round_up(N, tm_eff)

    x2 = x.reshape(N, D)
    if n_pad != N:
        x2 = jnp.pad(x2, ((0, n_pad - N), (0, 0)))

    w_in = w.astype(jnp.bfloat16) if mxu_bf16 else w
    b2 = b.reshape(1, D)
    g2 = gamma.reshape(1, D)
    be2 = beta.reshape(1, D)
    seed_arr = jnp.array([seed], dtype=jnp.int32)

    kernel = functools.partial(_residual_kernel, float(p_drop), bool(mxu_bf16))

    grid = (n_pad // tm_eff,)

    # VMEM budget: double-buffered activation tiles + resident weight.
    w_bytes = 2 if mxu_bf16 else 4
    est = 2 * 2 * (tm_eff * D * 4)        # x tile + out tile, 2 buffers each, f32
    est += 2 * D * D * w_bytes            # weight, 2 buffers
    est += 2 * 3 * D * 4                  # bias / gamma / beta
    vmem_limit = int(min(max(2 * est, 32 * 1024 * 1024), 64 * 1024 * 1024))

    out = pl.pallas_call(
        kernel,
        out_shape=jax.ShapeDtypeStruct((n_pad, D), x.dtype),
        grid_spec=pltpu.PrefetchScalarGridSpec(
            num_scalar_prefetch=1,
            grid=grid,
            in_specs=[
                pl.BlockSpec((tm_eff, D), lambda i, seed: (i, 0)),   # x tile
                pl.BlockSpec((D, D), lambda i, seed: (0, 0)),        # weight (resident)
                pl.BlockSpec((1, D), lambda i, seed: (0, 0)),        # bias
                pl.BlockSpec((1, D), lambda i, seed: (0, 0)),        # LN gamma
                pl.BlockSpec((1, D), lambda i, seed: (0, 0)),        # LN beta
            ],
            out_specs=pl.BlockSpec((tm_eff, D), lambda i, seed: (i, 0)),
        ),
        compiler_params=pltpu.CompilerParams(
            dimension_semantics=("parallel",),       # independent row tiles -> dual TC on v7x
            vmem_limit_bytes=vmem_limit,
        ),
    )(seed_arr, x2, w_in, b2, g2, be2)

    return out[:N].reshape(B, S, D)


def _reference(x, w, b, gamma, beta):
    """Pure-JAX reference for the p_drop=0 path (Linear + residual + LayerNorm)."""
    y = jnp.einsum("bsd,de->bse", x, w) + b
    z = x + y
    mu = jnp.mean(z, axis=-1, keepdims=True)
    var = jnp.mean((z - mu) ** 2, axis=-1, keepdims=True)
    return (z - mu) / jnp.sqrt(var + EPS) * gamma + beta


if __name__ == "__main__":
    B, S, D = 2, 8, 128   # small shapes; D = input_dim of the LayerNorm / Linear

    key = jax.random.PRNGKey(0)
    kx, kw, kb = jax.random.split(key, 3)

    x = jax.random.normal(kx, (B, S, D), dtype=jnp.float32)

    # Deterministic parameter init (Linear sublayer + LayerNorm affine).
    w = jax.random.normal(kw, (D, D), dtype=jnp.float32) / jnp.sqrt(D)   # y = x @ w
    b = jax.random.normal(kb, (D,), dtype=jnp.float32) * 0.01
    gamma = jnp.ones((D,), dtype=jnp.float32)
    beta = jnp.zeros((D,), dtype=jnp.float32)

    # Sanity check against a pure-JAX reference with dropout disabled
    # (loose tolerance: matmul runs in bf16 on the MXU).
    out_nodrop = residual_forward(x, w, b, gamma, beta, p_drop=0.0, seed=0)
    ref = _reference(x, w, b, gamma, beta)
    assert jnp.max(jnp.abs(out_nodrop - ref)) < 1e-1

    # Real run with dropout enabled (training mode of the PyTorch module).
    out = residual_forward(x, w, b, gamma, beta, p_drop=0.1, seed=0)
    jax.block_until_ready(out)
    assert out.shape == (B, S, D) and out.dtype == x.dtype
    assert bool(jnp.all(jnp.isfinite(out)))
    print("KERNEL_OK")
</pallas_src>

<mosaic_0001>
module attributes {stable_mosaic.version = 11 : i64} {
  func.func @_residual_kernel(%arg0: i32, %arg1: memref<1xi32, #tpu.memory_space<smem>>, %arg2: memref<16x128xf32, #tpu.memory_space<vmem>>, %arg3: memref<128x128xbf16, #tpu.memory_space<vmem>>, %arg4: memref<1x128xf32, #tpu.memory_space<vmem>>, %arg5: memref<1x128xf32, #tpu.memory_space<vmem>>, %arg6: memref<1x128xf32, #tpu.memory_space<vmem>>, %arg7: memref<16x128xf32, #tpu.memory_space<vmem>>) attributes {dimension_semantics = [#tpu.dimension_semantics<parallel>], iteration_bounds = array<i64: 1>, scalar_prefetch = 1 : i64, scratch_operands = 0 : i64, tpu.core_type = #tpu.core_type<tc>, window_params = [{transform_indices = @transform_0, window_bounds = array<i64: 16, 128>}, {pipeline_mode = #tpu.pipeline_mode<synchronous>, transform_indices = @transform_1, window_bounds = array<i64: 128, 128>}, {pipeline_mode = #tpu.pipeline_mode<synchronous>, transform_indices = @transform_2, window_bounds = array<i64: 1, 128>}, {pipeline_mode = #tpu.pipeline_mode<synchronous>, transform_indices = @transform_3, window_bounds = array<i64: 1, 128>}, {pipeline_mode = #tpu.pipeline_mode<synchronous>, transform_indices = @transform_4, window_bounds = array<i64: 1, 128>}, {transform_indices = @transform_5, window_bounds = array<i64: 16, 128>}]} {
    %c0 = arith.constant 0 : index
    %c0_0 = arith.constant 0 : index
    %0 = vector.load %arg2[%c0, %c0_0] : memref<16x128xf32, #tpu.memory_space<vmem>>, vector<16x128xf32>
    %1 = arith.truncf %0 : vector<16x128xf32> to vector<16x128xbf16>
    %c0_1 = arith.constant 0 : index
    %c0_2 = arith.constant 0 : index
    %2 = vector.load %arg3[%c0_1, %c0_2] : memref<128x128xbf16, #tpu.memory_space<vmem>>, vector<128x128xbf16>
    %cst = arith.constant dense<0.000000e+00> : vector<16x128xf32>
    %3 = tpu.matmul %1, %2, %cst {dimension_numbers = #tpu.dot_dimension_numbers<[1], [0], [0], [1], [0, 0, 1, 1], [], []>} : vector<16x128xbf16>, vector<128x128xbf16>, vector<16x128xf32> -> vector<16x128xf32>
    %c0_3 = arith.constant 0 : index
    %c0_4 = arith.constant 0 : index
    %4 = vector.load %arg4[%c0_3, %c0_4] : memref<1x128xf32, #tpu.memory_space<vmem>>, vector<1x128xf32>
    %5 = vector.broadcast %4 : vector<1x128xf32> to vector<16x128xf32>
    %6 = arith.addf %3, %5 : vector<16x128xf32>
    %7 = arith.addf %0, %6 : vector<16x128xf32>
    %cst_5 = arith.constant dense<0.000000e+00> : vector<16xf32>
    %8 = vector.multi_reduction <add>, %7, %cst_5 [1] : vector<16x128xf32> to vector<16xf32>
    %9 = vector.shape_cast %8 : vector<16xf32> to vector<16x1xf32>
    %10 = arith.mulf %7, %7 : vector<16x128xf32>
    %cst_6 = arith.constant dense<0.000000e+00> : vector<16xf32>
    %11 = vector.multi_reduction <add>, %10, %cst_6 [1] : vector<16x128xf32> to vector<16xf32>
    %12 = vector.shape_cast %11 : vector<16xf32> to vector<16x1xf32>
    %cst_7 = arith.constant 7.812500e-03 : f32
    %13 = vector.broadcast %cst_7 : f32 to vector<16x1xf32>
    %14 = arith.mulf %9, %13 : vector<16x1xf32>
    %cst_8 = arith.constant 7.812500e-03 : f32
    %15 = vector.broadcast %cst_8 : f32 to vector<16x1xf32>
    %16 = arith.mulf %12, %15 : vector<16x1xf32>
    %17 = arith.mulf %14, %14 : vector<16x1xf32>
    %18 = arith.subf %16, %17 : vector<16x1xf32>
    %cst_9 = arith.constant 0.000000e+00 : f32
    %19 = vector.broadcast %cst_9 : f32 to vector<16x1xf32>
    %20 = arith.maximumf %18, %19 : vector<16x1xf32>
    %cst_10 = arith.constant 9.99999974E-6 : f32
    %21 = vector.broadcast %cst_10 : f32 to vector<16x1xf32>
    %22 = arith.addf %20, %21 : vector<16x1xf32>
    %23 = math.rsqrt %22 : vector<16x1xf32>
    %24 = vector.broadcast %14 : vector<16x1xf32> to vector<16x128xf32>
    %25 = arith.subf %7, %24 : vector<16x128xf32>
    %26 = vector.broadcast %23 : vector<16x1xf32> to vector<16x128xf32>
    %27 = arith.mulf %25, %26 : vector<16x128xf32>
    %c0_11 = arith.constant 0 : index
    %c0_12 = arith.constant 0 : index
    %28 = vector.load %arg5[%c0_11, %c0_12] : memref<1x128xf32, #tpu.memory_space<vmem>>, vector<1x128xf32>
    %c0_13 = arith.constant 0 : index
    %c0_14 = arith.constant 0 : index
    %29 = vector.load %arg6[%c0_13, %c0_14] : memref<1x128xf32, #tpu.memory_space<vmem>>, vector<1x128xf32>
    %30 = vector.broadcast %28 : vector<1x128xf32> to vector<16x128xf32>
    %31 = arith.mulf %27, %30 : vector<16x128xf32>
    %32 = vector.broadcast %29 : vector<1x128xf32> to vector<16x128xf32>
    %33 = arith.addf %31, %32 : vector<16x128xf32>
    %c0_15 = arith.constant 0 : index
    %c0_16 = arith.constant 0 : index
    %34 = vector.load %arg7[%c0_15, %c0_16] : memref<16x128xf32, #tpu.memory_space<vmem>>, vector<16x128xf32>
    tpu.vector_store %arg7[%c0_15, %c0_16], %33 {strides = array<i32>} : memref<16x128xf32, #tpu.memory_space<vmem>>, vector<16x128xf32>,
    return
  }
  func.func @transform_0(%arg0: i32, %arg1: memref<1xi32, #tpu.memory_space<smem>>) -> (i32, i32) {
    %c0_i32 = arith.constant 0 : i32
    %c0_i32_0 = arith.constant 0 : i32
    return %arg0, %c0_i32 : i32, i32
  }
  func.func @transform_1(%arg0: i32, %arg1: memref<1xi32, #tpu.memory_space<smem>>) -> (i32, i32) {
    %c0_i32 = arith.constant 0 : i32
    %c0_i32_0 = arith.constant 0 : i32
    %c0_i32_1 = arith.constant 0 : i32
    return %c0_i32, %c0_i32_0 : i32, i32
  }
  func.func @transform_2(%arg0: i32, %arg1: memref<1xi32, #tpu.memory_space<smem>>) -> (i32, i32) {
    %c0_i32 = arith.constant 0 : i32
    %c0_i32_0 = arith.constant 0 : i32
    %c0_i32_1 = arith.constant 0 : i32
    return %c0_i32, %c0_i32_0 : i32, i32
  }
  func.func @transform_3(%arg0: i32, %arg1: memref<1xi32, #tpu.memory_space<smem>>) -> (i32, i32) {
    %c0_i32 = arith.constant 0 : i32
    %c0_i32_0 = arith.constant 0 : i32
    %c0_i32_1 = arith.constant 0 : i32
    return %c0_i32, %c0_i32_0 : i32, i32
  }
  func.func @transform_4(%arg0: i32, %arg1: memref<1xi32, #tpu.memory_space<smem>>) -> (i32, i32) {
    %c0_i32 = arith.constant 0 : i32
    %c0_i32_0 = arith.constant 0 : i32
    %c0_i32_1 = arith.constant 0 : i32
    return %c0_i32, %c0_i32_0 : i32, i32
  }
  func.func @transform_5(%arg0: i32, %arg1: memref<1xi32, #tpu.memory_space<smem>>) -> (i32, i32) {
    %c0_i32 = arith.constant 0 : i32
    %c0_i32_0 = arith.constant 0 : i32
    return %arg0, %c0_i32 : i32, i32
  }
}

</mosaic_0001>

<bundles_post_ra>
// kernel: tpu_custom_call.1
= control target key start
LH: loop header
LB: loop body
LE: loop exit
PB: predicated region body
PF: predicated region fallthrough
CT: control target
= control target key end

     0   :  { %12 = vsyncpa [#allocation5], 0  ;;  %s430_s0 = inlined_call_operand.<no memory space> [shape: s32[1], index: 0, kind: input, shape index: {}]   ;;  %s431_s1 = inlined_call_operand.hbm [shape: f32[16,128], index: 1, kind: input, shape index: {}]   ;;  %s432_s2 = inlined_call_operand.hbm [shape: bf16[128,128], index: 2, kind: input, shape index: {}]   ;;  %s433_s3 = inlined_call_operand.vmem [shape: f32[1,128], index: 3, kind: input, shape index: {}]   ;;  %s434_s4 = inlined_call_operand.vmem [shape: f32[1,128], index: 4, kind: input, shape index: {}]   ;;  %s435_s5 = inlined_call_operand.vmem [shape: f32[1,128], index: 5, kind: input, shape index: {}]   ;;  %s436_s6 = inlined_call_operand.hbm [shape: f32[16,128], index: 6, kind: output, shape index: {}]  }
   0x1   :  { %13 = vsyncpa [#allocation8], 0 }
   0x2   :  { %14 = vsyncpa [#allocation6], 0  ;;  %s362_s0 = smov [#allocation4]  }
   0x3   :  { %s20_s21 = sshll.u32 %s362_s0, 4  ;;  %s21_s21 = int_to_ptr.vmem [resolvable:$true] %s20_s21 }
   0x4   :  { %s304_s22 = scalar_lea.vmem %s21_s21, 256  ;;  %p309_p1 = scmp.lt.s32.totalorder %s21_s21, %s21_s21 }
   0x5   :  { %p305_p0 = scmp.ne.s32.totalorder %s21_s21, %s304_s22  ;;  %p310_p2 = scmp.lt.s32.totalorder %s304_s22, %s304_s22 }
   0x7   :  { %p311_p3 = por %p310_p2, %p309_p1 }
   0x9   :  { %p312_p4 = pnand %p311_p3, %p305_p0 }
   0xb   :  { %315 = shalt.err (!%p312_p4)
}
   0xc   :  { %s363_s23 = smov 128   ;;  %s364_s24 = smov 8  }
   0xd   :  { %26 = dma.hbm_to_vmem [thread:$0]  %s431_s1, 256, %s21_s21, [#allocation5], %s363_s23, %s363_s23, %s364_s24  }
   0xe   :  { %s365_s27 = smov [#allocation7]  }
   0xf   :  { %s32_s28 = sshll.u32 %s365_s27, 4  ;;  %s33_s28 = int_to_ptr.vmem [resolvable:$true] %s32_s28 }
  0x10   :  { %s324_s29 = scalar_lea.vmem %s33_s28, 1024  ;;  %p329_p6 = scmp.lt.s32.totalorder %s33_s28, %s33_s28 }
  0x11   :  { %p325_p5 = scmp.ne.s32.totalorder %s33_s28, %s324_s29  ;;  %p330_p7 = scmp.lt.s32.totalorder %s324_s29, %s324_s29 }
  0x13   :  { %p331_p8 = por %p330_p7, %p329_p6 }
  0x15   :  { %p332_p9 = pnand %p331_p8, %p325_p5 }
  0x17   :  { %335 = shalt.err (!%p332_p9)
}
  0x18   :  { %s366_s30 = smov 64   ;;  %s367_s7 = smov 4  }
  0x19   :  { %38 = dma.hbm_to_vmem [thread:$0]  %s432_s2, 1024, %s33_s28, [#allocation8], %s366_s30, %s366_s30, %s367_s7  }
  0x1a   :  { %356 = dma.done.wait [#allocation5], 256  }
  0x1b   :  { %357 = vsyncadd [#allocation5], 4294967040 }
  0x1c   :  { %358 = dma.done.wait [#allocation8], 1024  }
  0x1d   :  { %359 = vsyncadd [#allocation8], 4294966272  ;;  %v368_v0 = vmov 0.0   ;;  %vm369_vm0 = vmmov 0   ;;  %v284_v1 = vld [vmem:[#allocation7 + $0x38] sm:$0xff]   ;;  %v285_v2 = vld [vmem:[#allocation7 + $0x30] sm:$0xff]  }
  0x1e   :  { %255 = vmatprep.subr.bf16.mxu0 %v368_v0  ;;  %271 = vmatprep.mubr.msk.bf16.mxu0 %vm369_vm0, %v368_v0  ;;  %v286_v3 = vld [vmem:[#allocation7 + $0x28] sm:$0xff]   ;;  %v287_v4 = vld [vmem:[#allocation7 + $0x20] sm:$0xff]   ;;  %v288_v5 = vld [vmem:[#allocation7 + $0x18] sm:$0xff]   ;;  %s370_s13 = smov [#allocation9]  }
  0x1f   :  { %256 = vmatpush3.bf16.msra.mxu0 %v284_v1  ;;  %v289_v6 = vld [vmem:[#allocation7 + $0x10] sm:$0xff]   ;;  %v290_v7 = vld [vmem:[#allocation7 + $0x8] sm:$0xff]   ;;  %v291_v8 = vld [vmem:[#allocation7] sm:$0xff]   ;;  %s222_s14 = sshll.u32 %s370_s13, 4  ;;  %s223_s14 = int_to_ptr.vmem [resolvable:$true] %s222_s14 }
  0x20   :  { %257 = vmatprep.subr.bf16.mxu0 %v368_v0  ;;  %v52_v9 = vld [vmem:[#allocation4] sm:$0xff]  ;;  %v53_v10 = vld [vmem:[#allocation4 + $0x8] sm:$0xff]  ;;  %s336_s15 = scalar_lea.vmem %s223_s14, 256  ;;  %p341_p11 = scmp.lt.s32.totalorder %s223_s14, %s223_s14 }
  0x21   :  { %v54_v11 = vpack.c.bf16 %v53_v10, %v52_v9  ;;  %v235_v12 = vld [vmem:[%s433_s3] ss:$0 sm:$0xff]  ;;  %p337_p10 = scmp.ne.s32.totalorder %s223_s14, %s336_s15  ;;  %p342_p12 = scmp.lt.s32.totalorder %s336_s15, %s336_s15 }
  0x22   :  { %v244_v41 = vld [vmem:[%s434_s4] ss:$0 sm:$0xff] }
  0x23   :  { %258 = vmatpush3.bf16.msra.mxu0 %v285_v2  ;;  %v245_v43 = vld [vmem:[%s435_s5] ss:$0 sm:$0xff]  ;;  %p343_p13 = por %p342_p12, %p341_p11 }
  0x24   :  { %259 = vmatprep.subr.bf16.mxu0 %v368_v0 }
  0x25   :  { %p344_p0 = pnand %p343_p13, %p337_p10 }
  0x27   :  { %260 = vmatpush3.bf16.msra.mxu0 %v286_v3 }
  0x28   :  { %261 = vmatprep.subr.bf16.mxu0 %v368_v0 }
  0x2b   :  { %262 = vmatpush3.bf16.msra.mxu0 %v287_v4 }
  0x2c   :  { %263 = vmatprep.subr.bf16.mxu0 %v368_v0 }
  0x2f   :  { %264 = vmatpush3.bf16.msra.mxu0 %v288_v5 }
  0x30   :  { %265 = vmatprep.subr.bf16.mxu0 %v368_v0 }
  0x33   :  { %266 = vmatpush3.bf16.msra.mxu0 %v289_v6 }
  0x34   :  { %267 = vmatprep.subr.bf16.mxu0 %v368_v0 }
  0x37   :  { %268 = vmatpush3.bf16.msra.mxu0 %v290_v7 }
  0x38   :  { %269 = vmatprep.subr.bf16.mxu0 %v368_v0 }
  0x3b   :  { %270 = vmatpush3.bf16.msra.mxu0 %v291_v8 }
  0x3e   :  { %272 = vmatmul.mubr.bf16.vlgmr.msra.gmra.mxu0 %v54_v11 }
  0xfe   :  { %v160_v13 = vpop.f32.mrf.mxu0 }
  0xff   :  { %v161_v14 = vadd.f32 %v235_v12, %v160_v13 }
 0x100   :  { %v273_v15 = vpop.f32.mrf.mxu0 }
 0x101   :  { %v167_v16 = vadd.f32 %v161_v14, %v52_v9 }
 0x102   :  { %v163_v17 = vpop.f32.mrf.mxu0 }
 0x103   :  { %v164_v18 = vadd.f32 %v235_v12, %v163_v17  ;;  %169 = vadd.xlane.f32.xlu0 %v167_v16  ;;  %v173_v19 = vmul.f32 %v167_v16, %v167_v16 }
 0x104   :  { %v274_v20 = vpop.f32.mrf.mxu0 }
 0x105   :  { %v168_v21 = vadd.f32 %v164_v18, %v53_v10  ;;  %175 = vadd.xlane.f32.xlu1 %v173_v19 }
 0x107   :  { %171 = vadd.xlane.f32.xlu0 %v168_v21  ;;  %v174_v22 = vmul.f32 %v168_v21, %v168_v21 }
 0x109   :  { %177 = vadd.xlane.f32.xlu1 %v174_v22 }
 0x18c   :  { %v170_v23 = vpop.xlane.xlu0 %169 }
 0x18d   :  { %v179_v24 = vmul.f32 0.0078125, %v170_v23 }
 0x18e   :  { %v176_v25 = vpop.xlane.xlu1 %175 }
 0x18f   :  { %v183_v26 = vmul.f32 %v179_v24, %v179_v24  ;;  %v181_v27 = vmul.f32 0.0078125, %v176_v25  ;;  %v193_v39 = vsub.f32 %v167_v16, %v179_v24 }
 0x190   :  { %v172_v28 = vpop.xlane.xlu0 %171 }
 0x191   :  { %v185_v29 = vsub.f32 %v181_v27, %v183_v26  ;;  %v180_v30 = vmul.f32 0.0078125, %v172_v28 }
 0x192   :  { %v178_v31 = vpop.xlane.xlu1 %177 }
 0x193   :  { %v187_v32 = vmax.f32 %v185_v29, 0.0  ;;  %v184_v33 = vmul.f32 %v180_v30, %v180_v30  ;;  %v182_v34 = vmul.f32 0.0078125, %v178_v31  ;;  %v194_v44 = vsub.f32 %v168_v21, %v180_v30 }
 0x195   :  { %v189_v35 = vadd.f32 1e-05, %v187_v32  ;;  %v186_v36 = vsub.f32 %v182_v34, %v184_v33 }
 0x197   :  { %292 = vrsqrt.f32 %v189_v35  ;;  %v188_v37 = vmax.f32 %v186_v36, 0.0 }
 0x199   :  { %v190_v38 = vadd.f32 1e-05, %v188_v37 }
 0x19b   :  { %294 = vrsqrt.f32 %v190_v38 }
 0x1a4   :  { %v293_v40 = vpop.eup %292 }
 0x1a5   :  { %v195_v42 = vmul.f32 %v293_v40, %v193_v39 }
 0x1a7   :  { %v205_v45 = vmul.f32 %v244_v41, %v195_v42 }
 0x1a8   :  { %v295_v46 = vpop.eup %294 }
 0x1a9   :  { %v196_v47 = vmul.f32 %v295_v46, %v194_v44  ;;  %v213_v48 = vadd.f32 %v245_v43, %v205_v45 }
 0x1ab   :  { %v206_v49 = vmul.f32 %v244_v41, %v196_v47  ;;  %215 = vst [vmem:[#allocation9] sm:$0xff] %v213_v48 }
 0x1ad   :  { %v214_v50 = vadd.f32 %v245_v43, %v206_v49 }
 0x1af   :  { %216 = vst [vmem:[#allocation9 + $0x8] sm:$0xff] %v214_v50 }
 0x1b0   :  { %347 = shalt.err (!%p344_p0)
}
 0x1b1   :  { %228 = dma.vmem_to_hbm [thread:$0]  %s223_s14, 256, %s436_s6, [#allocation6], %s363_s23, %s363_s23, %s364_s24  }
 0x1b2   :  { %360 = dma.done.wait [#allocation6], 256  }
 0x1b3   :  { %361 = vsyncadd [#allocation6], 4294967040 }
 0x1b4   :  { %232 = vsyncpa [#allocation5], 1 }
 0x1b5   :  { %233 = vsyncpa [#allocation8], 1 }
 0x1b6   :  { %234 = vsyncpa [#allocation6], 1 }

</bundles_post_ra>
